<compile_context>
chip_gen: v5e
topology: v5e:2x2
jax: 0.10.0
libtpu: 0.0.40
codegen_flags: <defaults>
</compile_context>

<pallas_src>
import math

import jax
import jax.numpy as jnp
from jax.experimental import pallas as pl
from jax.experimental.pallas import tpu as pltpu


# ----------------------------- Pallas kernel --------------------------------
def dense_mlp2_kernel(xT_ref, win_ref, bin_ref,
                      w1_ref, b1_ref, w2_ref, b2_ref,
                      w3_ref, b3_ref, w4_ref, b4_ref,
                      wt_ref, bt_ref, wout_ref, bout_ref,
                      oT_ref, cat_ref):
    H = w1_ref.shape[0]
    cdt = cat_ref.dtype          # matmul operand dtype (f32 or bf16)

    relu = lambda v: jnp.maximum(v, 0.0)
    mm = lambda w, a: jnp.dot(w, a, preferred_element_type=jnp.float32)

    # Input layer: h = relu(Win @ x^T + b_in), shape (H, batch_tile), f32.
    h = relu(mm(win_ref[...], xT_ref[...].astype(cdt)) + bin_ref[...])

    def dense_block(h):
        # The growing concatenation lives in the VMEM scratch; each fc is one
        # matmul against its first k*H rows.  Weight refs are read at point of
        # use so no large weight values stay live across the whole block.
        cat_ref[0:H, :] = h.astype(cdt)
        o1 = relu(mm(w1_ref[...], cat_ref[0:H, :]) + b1_ref[...])
        cat_ref[H:2 * H, :] = o1.astype(cdt)
        o2 = relu(mm(w2_ref[...], cat_ref[0:2 * H, :]) + b2_ref[...])
        cat_ref[2 * H:3 * H, :] = o2.astype(cdt)
        o3 = relu(mm(w3_ref[...], cat_ref[0:3 * H, :]) + b3_ref[...])
        cat_ref[3 * H:4 * H, :] = o3.astype(cdt)
        o4 = relu(mm(w4_ref[...], cat_ref[0:4 * H, :]) + b4_ref[...])
        cat_ref[4 * H:5 * H, :] = o4.astype(cdt)
        ht = relu(mm(wt_ref[...], cat_ref[0:5 * H, :]) + bt_ref[...])
        return ht

    h = dense_block(h)   # block 1
    h = dense_block(h)   # block 2 (shared weights, as in the PyTorch module)
    oT_ref[...] = (mm(wout_ref[...], h.astype(cdt)) + bout_ref[...]).astype(oT_ref.dtype)


# ------------------------------- Wrapper -------------------------------------
def dense_mlp2_forward(x, params, *, batch_tile=256):
    B, D_in = x.shape
    H = params["w1"].shape[0]
    D_out = params["wout"].shape[0]
    wdt = params["w1"].dtype

    batch_tile = min(batch_tile, B)
    if batch_tile < B:
        assert batch_tile % 128 == 0, "batch_tile must be a multiple of the 128-lane width"
    num_tiles = pl.cdiv(B, batch_tile)

    # Transpose once so batch is the lane / MXU-N axis inside the kernel.
    xT = x.T  # (D_in, B)

    weight_names = ["win", "bin", "w1", "b1", "w2", "b2", "w3", "b3",
                    "w4", "b4", "wt", "bt", "wout", "bout"]

    def full_spec(name):
        # Whole weight resident in VMEM, constant block index across the grid.
        # TODO(synk): for large H, use bf16 weights and single-buffer these
        # constant-index specs (pipeline_mode) to fit v7x's 64 MiB VMEM.
        return pl.BlockSpec(params[name].shape, lambda i: (0, 0))

    in_specs = [pl.BlockSpec((D_in, batch_tile), lambda i: (0, i))]
    in_specs += [full_spec(n) for n in weight_names]

    oT = pl.pallas_call(
        dense_mlp2_kernel,
        out_shape=jax.ShapeDtypeStruct((D_out, B), jnp.float32),
        grid=(num_tiles,),
        in_specs=in_specs,
        out_specs=pl.BlockSpec((D_out, batch_tile), lambda i: (0, i)),
        scratch_shapes=[pltpu.VMEM((5 * H, batch_tile), wdt)],
        compiler_params=pltpu.CompilerParams(
            dimension_semantics=("parallel",),
            vmem_limit_bytes=32 * 1024 * 1024),  # raise further if H/batch_tile scale up
    )(xT, *[params[n] for n in weight_names])

    out = oT.T  # back to (B, D_out)
    # PyTorch module returns (out, x_temp) where x_temp is the same tensor.
    return out, out


# ------------------------- Parameter construction ----------------------------
def init_params(key, input_dim, hidden, output_dim, weight_dtype=jnp.float32):
    """nn.Linear-style U(-1/sqrt(fan_in), 1/sqrt(fan_in)) init.

    Weights are stored (out_features, in_features) like PyTorch; biases are
    (out_features, 1) f32 (lane-broadcast inside the kernel)."""
    def linear(k, fan_in, fan_out):
        kw, kb = jax.random.split(k)
        bound = 1.0 / math.sqrt(fan_in)
        w = jax.random.uniform(kw, (fan_out, fan_in), jnp.float32, -bound, bound)
        b = jax.random.uniform(kb, (fan_out, 1), jnp.float32, -bound, bound)
        return w.astype(weight_dtype), b

    keys = jax.random.split(key, 7)
    p = {}
    p["win"], p["bin"] = linear(keys[0], input_dim, hidden)
    p["w1"], p["b1"] = linear(keys[1], hidden, hidden)
    p["w2"], p["b2"] = linear(keys[2], 2 * hidden, hidden)
    p["w3"], p["b3"] = linear(keys[3], 3 * hidden, hidden)
    p["w4"], p["b4"] = linear(keys[4], 4 * hidden, hidden)
    p["wt"], p["bt"] = linear(keys[5], 5 * hidden, hidden)
    p["wout"], p["bout"] = linear(keys[6], hidden, output_dim)
    return p


# ----------------------------- JAX reference ----------------------------------
def dense_mlp2_ref(x, p):
    relu = lambda v: jnp.maximum(v, 0.0)

    def lin(a, w, b):
        y = jnp.dot(a.astype(w.dtype), w.T, preferred_element_type=jnp.float32)
        return y + b.reshape(1, -1)

    out0 = relu(lin(x, p["win"], p["bin"]))

    def block(h):
        o1 = relu(lin(h, p["w1"], p["b1"]))
        o2 = relu(lin(jnp.concatenate([h, o1], 1), p["w2"], p["b2"]))
        o3 = relu(lin(jnp.concatenate([h, o1, o2], 1), p["w3"], p["b3"]))
        o4 = relu(lin(jnp.concatenate([h, o1, o2, o3], 1), p["w4"], p["b4"]))
        ht = relu(lin(jnp.concatenate([h, o1, o2, o3, o4], 1), p["wt"], p["bt"]))
        return ht

    h2 = block(block(out0))
    out = lin(h2, p["wout"], p["bout"])
    return out, out


# --------------------------------- Main ---------------------------------------
if __name__ == "__main__":
    input_dim, hidden, output_dim = 16, 32, 8
    batch = 256  # 2 grid steps at batch_tile=128 (keeps both v7x TCs busy)

    key = jax.random.PRNGKey(0)
    kx, kp = jax.random.split(key)
    x = jax.random.normal(kx, (batch, input_dim), jnp.float32)

    # ---- f32 weights: strict correctness check -------------------------------
    params_f32 = init_params(kp, input_dim, hidden, output_dim, jnp.float32)
    out, x_temp = dense_mlp2_forward(x, params_f32, batch_tile=128)
    out = jax.block_until_ready(out)
    ref_out, _ = dense_mlp2_ref(x, params_f32)
    assert out.shape == (batch, output_dim)
    assert jnp.allclose(out, ref_out, atol=1e-3, rtol=1e-3), "f32 mismatch vs reference"
    assert out is x_temp  # second return is the same tensor, like PyTorch

    # ---- bf16 weights (MXU-native), f32 accumulation: matched bf16 reference -
    params_bf16 = {k: (v.astype(jnp.bfloat16) if k.startswith("w") else v)
                   for k, v in params_f32.items()}
    out_bf, _ = dense_mlp2_forward(x, params_bf16, batch_tile=128)
    out_bf = jax.block_until_ready(out_bf)
    ref_bf, _ = dense_mlp2_ref(x, params_bf16)
    assert jnp.allclose(out_bf, ref_bf, atol=5e-2, rtol=5e-2), "bf16 mismatch vs reference"

    print("KERNEL_OK")
</pallas_src>

<mosaic_0001>
module attributes {stable_mosaic.version = 11 : i64} {
  func.func @dense_mlp2_kernel(%arg0: i32, %arg1: memref<16x128xf32, #tpu.memory_space<vmem>>, %arg2: memref<32x16xf32, #tpu.memory_space<vmem>>, %arg3: memref<32x1xf32, #tpu.memory_space<vmem>>, %arg4: memref<32x32xf32, #tpu.memory_space<vmem>>, %arg5: memref<32x1xf32, #tpu.memory_space<vmem>>, %arg6: memref<32x64xf32, #tpu.memory_space<vmem>>, %arg7: memref<32x1xf32, #tpu.memory_space<vmem>>, %arg8: memref<32x96xf32, #tpu.memory_space<vmem>>, %arg9: memref<32x1xf32, #tpu.memory_space<vmem>>, %arg10: memref<32x128xf32, #tpu.memory_space<vmem>>, %arg11: memref<32x1xf32, #tpu.memory_space<vmem>>, %arg12: memref<32x160xf32, #tpu.memory_space<vmem>>, %arg13: memref<32x1xf32, #tpu.memory_space<vmem>>, %arg14: memref<8x32xf32, #tpu.memory_space<vmem>>, %arg15: memref<8x1xf32, #tpu.memory_space<vmem>>, %arg16: memref<8x128xf32, #tpu.memory_space<vmem>>, %arg17: memref<160x128xf32, #tpu.memory_space<vmem>>) attributes {dimension_semantics = [#tpu.dimension_semantics<parallel>], iteration_bounds = array<i64: 2>, scalar_prefetch = 0 : i64, scratch_operands = 1 : i64, tpu.core_type = #tpu.core_type<tc>, window_params = [{transform_indices = @transform_0, window_bounds = array<i64: 16, 128>}, {pipeline_mode = #tpu.pipeline_mode<synchronous>, transform_indices = @transform_1, window_bounds = array<i64: 32, 16>}, {pipeline_mode = #tpu.pipeline_mode<synchronous>, transform_indices = @transform_2, window_bounds = array<i64: 32, 1>}, {pipeline_mode = #tpu.pipeline_mode<synchronous>, transform_indices = @transform_3, window_bounds = array<i64: 32, 32>}, {pipeline_mode = #tpu.pipeline_mode<synchronous>, transform_indices = @transform_4, window_bounds = array<i64: 32, 1>}, {pipeline_mode = #tpu.pipeline_mode<synchronous>, transform_indices = @transform_5, window_bounds = array<i64: 32, 64>}, {pipeline_mode = #tpu.pipeline_mode<synchronous>, transform_indices = @transform_6, window_bounds = array<i64: 32, 1>}, {pipeline_mode = #tpu.pipeline_mode<synchronous>, transform_indices = @transform_7, window_bounds = array<i64: 32, 96>}, {pipeline_mode = #tpu.pipeline_mode<synchronous>, transform_indices = @transform_8, window_bounds = array<i64: 32, 1>}, {pipeline_mode = #tpu.pipeline_mode<synchronous>, transform_indices = @transform_9, window_bounds = array<i64: 32, 128>}, {pipeline_mode = #tpu.pipeline_mode<synchronous>, transform_indices = @transform_10, window_bounds = array<i64: 32, 1>}, {pipeline_mode = #tpu.pipeline_mode<synchronous>, transform_indices = @transform_11, window_bounds = array<i64: 32, 160>}, {pipeline_mode = #tpu.pipeline_mode<synchronous>, transform_indices = @transform_12, window_bounds = array<i64: 32, 1>}, {pipeline_mode = #tpu.pipeline_mode<synchronous>, transform_indices = @transform_13, window_bounds = array<i64: 8, 32>}, {pipeline_mode = #tpu.pipeline_mode<synchronous>, transform_indices = @transform_14, window_bounds = array<i64: 8, 1>}, {transform_indices = @transform_15, window_bounds = array<i64: 8, 128>}]} {
    %c0 = arith.constant 0 : index
    %c0_0 = arith.constant 0 : index
    %0 = vector.load %arg2[%c0, %c0_0] : memref<32x16xf32, #tpu.memory_space<vmem>>, vector<32x16xf32>
    %c0_1 = arith.constant 0 : index
    %c0_2 = arith.constant 0 : index
    %1 = vector.load %arg1[%c0_1, %c0_2] : memref<16x128xf32, #tpu.memory_space<vmem>>, vector<16x128xf32>
    %cst = arith.constant dense<0.000000e+00> : vector<32x128xf32>
    %2 = tpu.matmul %0, %1, %cst {dimension_numbers = #tpu.dot_dimension_numbers<[1], [0], [0], [1], [0, 0, 1, 1], [], []>} : vector<32x16xf32>, vector<16x128xf32>, vector<32x128xf32> -> vector<32x128xf32>
    %c0_3 = arith.constant 0 : index
    %c0_4 = arith.constant 0 : index
    %3 = vector.load %arg3[%c0_3, %c0_4] : memref<32x1xf32, #tpu.memory_space<vmem>>, vector<32x1xf32>
    %4 = vector.broadcast %3 : vector<32x1xf32> to vector<32x128xf32>
    %5 = arith.addf %2, %4 : vector<32x128xf32>
    %cst_5 = arith.constant 0.000000e+00 : f32
    %6 = vector.broadcast %cst_5 : f32 to vector<32x128xf32>
    %7 = arith.maximumf %5, %6 : vector<32x128xf32>
    %c0_6 = arith.constant 0 : index
    %c0_7 = arith.constant 0 : index
    %8 = vector.load %arg17[%c0_6, %c0_7] : memref<160x128xf32, #tpu.memory_space<vmem>>, vector<32x128xf32>
    tpu.vector_store %arg17[%c0_6, %c0_7], %7 {strides = array<i32>} : memref<160x128xf32, #tpu.memory_space<vmem>>, vector<32x128xf32>,
    %c0_8 = arith.constant 0 : index
    %c0_9 = arith.constant 0 : index
    %9 = vector.load %arg4[%c0_8, %c0_9] : memref<32x32xf32, #tpu.memory_space<vmem>>, vector<32x32xf32>
    %c0_10 = arith.constant 0 : index
    %c0_11 = arith.constant 0 : index
    %10 = vector.load %arg17[%c0_10, %c0_11] : memref<160x128xf32, #tpu.memory_space<vmem>>, vector<32x128xf32>
    %cst_12 = arith.constant dense<0.000000e+00> : vector<32x128xf32>
    %11 = tpu.matmul %9, %10, %cst_12 {dimension_numbers = #tpu.dot_dimension_numbers<[1], [0], [0], [1], [0, 0, 1, 1], [], []>} : vector<32x32xf32>, vector<32x128xf32>, vector<32x128xf32> -> vector<32x128xf32>
    %c0_13 = arith.constant 0 : index
    %c0_14 = arith.constant 0 : index
    %12 = vector.load %arg5[%c0_13, %c0_14] : memref<32x1xf32, #tpu.memory_space<vmem>>, vector<32x1xf32>
    %13 = vector.broadcast %12 : vector<32x1xf32> to vector<32x128xf32>
    %14 = arith.addf %11, %13 : vector<32x128xf32>
    %cst_15 = arith.constant 0.000000e+00 : f32
    %15 = vector.broadcast %cst_15 : f32 to vector<32x128xf32>
    %16 = arith.maximumf %14, %15 : vector<32x128xf32>
    %c32 = arith.constant 32 : index
    %c0_16 = arith.constant 0 : index
    %17 = vector.load %arg17[%c32, %c0_16] : memref<160x128xf32, #tpu.memory_space<vmem>>, vector<32x128xf32>
    tpu.vector_store %arg17[%c32, %c0_16], %16 {strides = array<i32>} : memref<160x128xf32, #tpu.memory_space<vmem>>, vector<32x128xf32>,
    %c0_17 = arith.constant 0 : index
    %c0_18 = arith.constant 0 : index
    %18 = vector.load %arg6[%c0_17, %c0_18] : memref<32x64xf32, #tpu.memory_space<vmem>>, vector<32x64xf32>
    %c0_19 = arith.constant 0 : index
    %c0_20 = arith.constant 0 : index
    %19 = vector.load %arg17[%c0_19, %c0_20] : memref<160x128xf32, #tpu.memory_space<vmem>>, vector<64x128xf32>
    %cst_21 = arith.constant dense<0.000000e+00> : vector<32x128xf32>
    %20 = tpu.matmul %18, %19, %cst_21 {dimension_numbers = #tpu.dot_dimension_numbers<[1], [0], [0], [1], [0, 0, 1, 1], [], []>} : vector<32x64xf32>, vector<64x128xf32>, vector<32x128xf32> -> vector<32x128xf32>
    %c0_22 = arith.constant 0 : index
    %c0_23 = arith.constant 0 : index
    %21 = vector.load %arg7[%c0_22, %c0_23] : memref<32x1xf32, #tpu.memory_space<vmem>>, vector<32x1xf32>
    %22 = vector.broadcast %21 : vector<32x1xf32> to vector<32x128xf32>
    %23 = arith.addf %20, %22 : vector<32x128xf32>
    %cst_24 = arith.constant 0.000000e+00 : f32
    %24 = vector.broadcast %cst_24 : f32 to vector<32x128xf32>
    %25 = arith.maximumf %23, %24 : vector<32x128xf32>
    %c64 = arith.constant 64 : index
    %c0_25 = arith.constant 0 : index
    %26 = vector.load %arg17[%c64, %c0_25] : memref<160x128xf32, #tpu.memory_space<vmem>>, vector<32x128xf32>
    tpu.vector_store %arg17[%c64, %c0_25], %25 {strides = array<i32>} : memref<160x128xf32, #tpu.memory_space<vmem>>, vector<32x128xf32>,
    %c0_26 = arith.constant 0 : index
    %c0_27 = arith.constant 0 : index
    %27 = vector.load %arg8[%c0_26, %c0_27] : memref<32x96xf32, #tpu.memory_space<vmem>>, vector<32x96xf32>
    %c0_28 = arith.constant 0 : index
    %c0_29 = arith.constant 0 : index
    %28 = vector.load %arg17[%c0_28, %c0_29] : memref<160x128xf32, #tpu.memory_space<vmem>>, vector<96x128xf32>
    %cst_30 = arith.constant dense<0.000000e+00> : vector<32x128xf32>
    %29 = tpu.matmul %27, %28, %cst_30 {dimension_numbers = #tpu.dot_dimension_numbers<[1], [0], [0], [1], [0, 0, 1, 1], [], []>} : vector<32x96xf32>, vector<96x128xf32>, vector<32x128xf32> -> vector<32x128xf32>
    %c0_31 = arith.constant 0 : index
    %c0_32 = arith.constant 0 : index
    %30 = vector.load %arg9[%c0_31, %c0_32] : memref<32x1xf32, #tpu.memory_space<vmem>>, vector<32x1xf32>
    %31 = vector.broadcast %30 : vector<32x1xf32> to vector<32x128xf32>
    %32 = arith.addf %29, %31 : vector<32x128xf32>
    %cst_33 = arith.constant 0.000000e+00 : f32
    %33 = vector.broadcast %cst_33 : f32 to vector<32x128xf32>
    %34 = arith.maximumf %32, %33 : vector<32x128xf32>
    %c96 = arith.constant 96 : index
    %c0_34 = arith.constant 0 : index
    %35 = vector.load %arg17[%c96, %c0_34] : memref<160x128xf32, #tpu.memory_space<vmem>>, vector<32x128xf32>
    tpu.vector_store %arg17[%c96, %c0_34], %34 {strides = array<i32>} : memref<160x128xf32, #tpu.memory_space<vmem>>, vector<32x128xf32>,
    %c0_35 = arith.constant 0 : index
    %c0_36 = arith.constant 0 : index
    %36 = vector.load %arg10[%c0_35, %c0_36] : memref<32x128xf32, #tpu.memory_space<vmem>>, vector<32x128xf32>
    %c0_37 = arith.constant 0 : index
    %c0_38 = arith.constant 0 : index
    %37 = vector.load %arg17[%c0_37, %c0_38] : memref<160x128xf32, #tpu.memory_space<vmem>>, vector<128x128xf32>
    %cst_39 = arith.constant dense<0.000000e+00> : vector<32x128xf32>
    %38 = tpu.matmul %36, %37, %cst_39 {dimension_numbers = #tpu.dot_dimension_numbers<[1], [0], [0], [1], [0, 0, 1, 1], [], []>} : vector<32x128xf32>, vector<128x128xf32>, vector<32x128xf32> -> vector<32x128xf32>
    %c0_40 = arith.constant 0 : index
    %c0_41 = arith.constant 0 : index
    %39 = vector.load %arg11[%c0_40, %c0_41] : memref<32x1xf32, #tpu.memory_space<vmem>>, vector<32x1xf32>
    %40 = vector.broadcast %39 : vector<32x1xf32> to vector<32x128xf32>
    %41 = arith.addf %38, %40 : vector<32x128xf32>
    %cst_42 = arith.constant 0.000000e+00 : f32
    %42 = vector.broadcast %cst_42 : f32 to vector<32x128xf32>
    %43 = arith.maximumf %41, %42 : vector<32x128xf32>
    %c128 = arith.constant 128 : index
    %c0_43 = arith.constant 0 : index
    %44 = vector.load %arg17[%c128, %c0_43] : memref<160x128xf32, #tpu.memory_space<vmem>>, vector<32x128xf32>
    tpu.vector_store %arg17[%c128, %c0_43], %43 {strides = array<i32>} : memref<160x128xf32, #tpu.memory_space<vmem>>, vector<32x128xf32>,
    %c0_44 = arith.constant 0 : index
    %c0_45 = arith.constant 0 : index
    %45 = vector.load %arg12[%c0_44, %c0_45] : memref<32x160xf32, #tpu.memory_space<vmem>>, vector<32x160xf32>
    %c0_46 = arith.constant 0 : index
    %c0_47 = arith.constant 0 : index
    %46 = vector.load %arg17[%c0_46, %c0_47] : memref<160x128xf32, #tpu.memory_space<vmem>>, vector<160x128xf32>
    %cst_48 = arith.constant dense<0.000000e+00> : vector<32x128xf32>
    %47 = tpu.matmul %45, %46, %cst_48 {dimension_numbers = #tpu.dot_dimension_numbers<[1], [0], [0], [1], [0, 0, 1, 1], [], []>} : vector<32x160xf32>, vector<160x128xf32>, vector<32x128xf32> -> vector<32x128xf32>
    %c0_49 = arith.constant 0 : index
    %c0_50 = arith.constant 0 : index
    %48 = vector.load %arg13[%c0_49, %c0_50] : memref<32x1xf32, #tpu.memory_space<vmem>>, vector<32x1xf32>
    %49 = vector.broadcast %48 : vector<32x1xf32> to vector<32x128xf32>
    %50 = arith.addf %47, %49 : vector<32x128xf32>
    %cst_51 = arith.constant 0.000000e+00 : f32
    %51 = vector.broadcast %cst_51 : f32 to vector<32x128xf32>
    %52 = arith.maximumf %50, %51 : vector<32x128xf32>
    %c0_52 = arith.constant 0 : index
    %c0_53 = arith.constant 0 : index
    %53 = vector.load %arg17[%c0_52, %c0_53] : memref<160x128xf32, #tpu.memory_space<vmem>>, vector<32x128xf32>
    tpu.vector_store %arg17[%c0_52, %c0_53], %52 {strides = array<i32>} : memref<160x128xf32, #tpu.memory_space<vmem>>, vector<32x128xf32>,
    %c0_54 = arith.constant 0 : index
    %c0_55 = arith.constant 0 : index
    %54 = vector.load %arg4[%c0_54, %c0_55] : memref<32x32xf32, #tpu.memory_space<vmem>>, vector<32x32xf32>
    %c0_56 = arith.constant 0 : index
    %c0_57 = arith.constant 0 : index
    %55 = vector.load %arg17[%c0_56, %c0_57] : memref<160x128xf32, #tpu.memory_space<vmem>>, vector<32x128xf32>
    %cst_58 = arith.constant dense<0.000000e+00> : vector<32x128xf32>
    %56 = tpu.matmul %54, %55, %cst_58 {dimension_numbers = #tpu.dot_dimension_numbers<[1], [0], [0], [1], [0, 0, 1, 1], [], []>} : vector<32x32xf32>, vector<32x128xf32>, vector<32x128xf32> -> vector<32x128xf32>
    %c0_59 = arith.constant 0 : index
    %c0_60 = arith.constant 0 : index
    %57 = vector.load %arg5[%c0_59, %c0_60] : memref<32x1xf32, #tpu.memory_space<vmem>>, vector<32x1xf32>
    %58 = vector.broadcast %57 : vector<32x1xf32> to vector<32x128xf32>
    %59 = arith.addf %56, %58 : vector<32x128xf32>
    %cst_61 = arith.constant 0.000000e+00 : f32
    %60 = vector.broadcast %cst_61 : f32 to vector<32x128xf32>
    %61 = arith.maximumf %59, %60 : vector<32x128xf32>
    %c32_62 = arith.constant 32 : index
    %c0_63 = arith.constant 0 : index
    %62 = vector.load %arg17[%c32_62, %c0_63] : memref<160x128xf32, #tpu.memory_space<vmem>>, vector<32x128xf32>
    tpu.vector_store %arg17[%c32_62, %c0_63], %61 {strides = array<i32>} : memref<160x128xf32, #tpu.memory_space<vmem>>, vector<32x128xf32>,
    %c0_64 = arith.constant 0 : index
    %c0_65 = arith.constant 0 : index
    %63 = vector.load %arg6[%c0_64, %c0_65] : memref<32x64xf32, #tpu.memory_space<vmem>>, vector<32x64xf32>
    %c0_66 = arith.constant 0 : index
    %c0_67 = arith.constant 0 : index
    %64 = vector.load %arg17[%c0_66, %c0_67] : memref<160x128xf32, #tpu.memory_space<vmem>>, vector<64x128xf32>
    %cst_68 = arith.constant dense<0.000000e+00> : vector<32x128xf32>
    %65 = tpu.matmul %63, %64, %cst_68 {dimension_numbers = #tpu.dot_dimension_numbers<[1], [0], [0], [1], [0, 0, 1, 1], [], []>} : vector<32x64xf32>, vector<64x128xf32>, vector<32x128xf32> -> vector<32x128xf32>
    %c0_69 = arith.constant 0 : index
    %c0_70 = arith.constant 0 : index
    %66 = vector.load %arg7[%c0_69, %c0_70] : memref<32x1xf32, #tpu.memory_space<vmem>>, vector<32x1xf32>
    %67 = vector.broadcast %66 : vector<32x1xf32> to vector<32x128xf32>
    %68 = arith.addf %65, %67 : vector<32x128xf32>
    %cst_71 = arith.constant 0.000000e+00 : f32
    %69 = vector.broadcast %cst_71 : f32 to vector<32x128xf32>
    %70 = arith.maximumf %68, %69 : vector<32x128xf32>
    %c64_72 = arith.constant 64 : index
    %c0_73 = arith.constant 0 : index
    %71 = vector.load %arg17[%c64_72, %c0_73] : memref<160x128xf32, #tpu.memory_space<vmem>>, vector<32x128xf32>
    tpu.vector_store %arg17[%c64_72, %c0_73], %70 {strides = array<i32>} : memref<160x128xf32, #tpu.memory_space<vmem>>, vector<32x128xf32>,
    %c0_74 = arith.constant 0 : index
    %c0_75 = arith.constant 0 : index
    %72 = vector.load %arg8[%c0_74, %c0_75] : memref<32x96xf32, #tpu.memory_space<vmem>>, vector<32x96xf32>
    %c0_76 = arith.constant 0 : index
    %c0_77 = arith.constant 0 : index
    %73 = vector.load %arg17[%c0_76, %c0_77] : memref<160x128xf32, #tpu.memory_space<vmem>>, vector<96x128xf32>
    %cst_78 = arith.constant dense<0.000000e+00> : vector<32x128xf32>
    %74 = tpu.matmul %72, %73, %cst_78 {dimension_numbers = #tpu.dot_dimension_numbers<[1], [0], [0], [1], [0, 0, 1, 1], [], []>} : vector<32x96xf32>, vector<96x128xf32>, vector<32x128xf32> -> vector<32x128xf32>
    %c0_79 = arith.constant 0 : index
    %c0_80 = arith.constant 0 : index
    %75 = vector.load %arg9[%c0_79, %c0_80] : memref<32x1xf32, #tpu.memory_space<vmem>>, vector<32x1xf32>
    %76 = vector.broadcast %75 : vector<32x1xf32> to vector<32x128xf32>
    %77 = arith.addf %74, %76 : vector<32x128xf32>
    %cst_81 = arith.constant 0.000000e+00 : f32
    %78 = vector.broadcast %cst_81 : f32 to vector<32x128xf32>
    %79 = arith.maximumf %77, %78 : vector<32x128xf32>
    %c96_82 = arith.constant 96 : index
    %c0_83 = arith.constant 0 : index
    %80 = vector.load %arg17[%c96_82, %c0_83] : memref<160x128xf32, #tpu.memory_space<vmem>>, vector<32x128xf32>
    tpu.vector_store %arg17[%c96_82, %c0_83], %79 {strides = array<i32>} : memref<160x128xf32, #tpu.memory_space<vmem>>, vector<32x128xf32>,
    %c0_84 = arith.constant 0 : index
    %c0_85 = arith.constant 0 : index
    %81 = vector.load %arg10[%c0_84, %c0_85] : memref<32x128xf32, #tpu.memory_space<vmem>>, vector<32x128xf32>
    %c0_86 = arith.constant 0 : index
    %c0_87 = arith.constant 0 : index
    %82 = vector.load %arg17[%c0_86, %c0_87] : memref<160x128xf32, #tpu.memory_space<vmem>>, vector<128x128xf32>
    %cst_88 = arith.constant dense<0.000000e+00> : vector<32x128xf32>
    %83 = tpu.matmul %81, %82, %cst_88 {dimension_numbers = #tpu.dot_dimension_numbers<[1], [0], [0], [1], [0, 0, 1, 1], [], []>} : vector<32x128xf32>, vector<128x128xf32>, vector<32x128xf32> -> vector<32x128xf32>
    %c0_89 = arith.constant 0 : index
    %c0_90 = arith.constant 0 : index
    %84 = vector.load %arg11[%c0_89, %c0_90] : memref<32x1xf32, #tpu.memory_space<vmem>>, vector<32x1xf32>
    %85 = vector.broadcast %84 : vector<32x1xf32> to vector<32x128xf32>
    %86 = arith.addf %83, %85 : vector<32x128xf32>
    %cst_91 = arith.constant 0.000000e+00 : f32
    %87 = vector.broadcast %cst_91 : f32 to vector<32x128xf32>
    %88 = arith.maximumf %86, %87 : vector<32x128xf32>
    %c128_92 = arith.constant 128 : index
    %c0_93 = arith.constant 0 : index
    %89 = vector.load %arg17[%c128_92, %c0_93] : memref<160x128xf32, #tpu.memory_space<vmem>>, vector<32x128xf32>
    tpu.vector_store %arg17[%c128_92, %c0_93], %88 {strides = array<i32>} : memref<160x128xf32, #tpu.memory_space<vmem>>, vector<32x128xf32>,
    %c0_94 = arith.constant 0 : index
    %c0_95 = arith.constant 0 : index
    %90 = vector.load %arg12[%c0_94, %c0_95] : memref<32x160xf32, #tpu.memory_space<vmem>>, vector<32x160xf32>
    %c0_96 = arith.constant 0 : index
    %c0_97 = arith.constant 0 : index
    %91 = vector.load %arg17[%c0_96, %c0_97] : memref<160x128xf32, #tpu.memory_space<vmem>>, vector<160x128xf32>
    %cst_98 = arith.constant dense<0.000000e+00> : vector<32x128xf32>
    %92 = tpu.matmul %90, %91, %cst_98 {dimension_numbers = #tpu.dot_dimension_numbers<[1], [0], [0], [1], [0, 0, 1, 1], [], []>} : vector<32x160xf32>, vector<160x128xf32>, vector<32x128xf32> -> vector<32x128xf32>
    %c0_99 = arith.constant 0 : index
    %c0_100 = arith.constant 0 : index
    %93 = vector.load %arg13[%c0_99, %c0_100] : memref<32x1xf32, #tpu.memory_space<vmem>>, vector<32x1xf32>
    %94 = vector.broadcast %93 : vector<32x1xf32> to vector<32x128xf32>
    %95 = arith.addf %92, %94 : vector<32x128xf32>
    %cst_101 = arith.constant 0.000000e+00 : f32
    %96 = vector.broadcast %cst_101 : f32 to vector<32x128xf32>
    %97 = arith.maximumf %95, %96 : vector<32x128xf32>
    %c0_102 = arith.constant 0 : index
    %c0_103 = arith.constant 0 : index
    %98 = vector.load %arg14[%c0_102, %c0_103] : memref<8x32xf32, #tpu.memory_space<vmem>>, vector<8x32xf32>
    %cst_104 = arith.constant dense<0.000000e+00> : vector<8x128xf32>
    %99 = tpu.matmul %98, %97, %cst_104 {dimension_numbers = #tpu.dot_dimension_numbers<[1], [0], [0], [1], [0, 0, 1, 1], [], []>} : vector<8x32xf32>, vector<32x128xf32>, vector<8x128xf32> -> vector<8x128xf32>
    %c0_105 = arith.constant 0 : index
    %c0_106 = arith.constant 0 : index
    %100 = vector.load %arg15[%c0_105, %c0_106] : memref<8x1xf32, #tpu.memory_space<vmem>>, vector<8x1xf32>
    %101 = vector.broadcast %100 : vector<8x1xf32> to vector<8x128xf32>
    %102 = arith.addf %99, %101 : vector<8x128xf32>
    %c0_107 = arith.constant 0 : index
    %c0_108 = arith.constant 0 : index
    %103 = vector.load %arg16[%c0_107, %c0_108] : memref<8x128xf32, #tpu.memory_space<vmem>>, vector<8x128xf32>
    tpu.vector_store %arg16[%c0_107, %c0_108], %102 {strides = array<i32>} : memref<8x128xf32, #tpu.memory_space<vmem>>, vector<8x128xf32>,
    return
  }
  func.func @transform_0(%arg0: i32) -> (i32, i32) {
    %c0_i32 = arith.constant 0 : i32
    %c0_i32_0 = arith.constant 0 : i32
    return %c0_i32, %arg0 : i32, i32
  }
  func.func @transform_1(%arg0: i32) -> (i32, i32) {
    %c0_i32 = arith.constant 0 : i32
    %c0_i32_0 = arith.constant 0 : i32
    %c0_i32_1 = arith.constant 0 : i32
    return %c0_i32, %c0_i32_0 : i32, i32
  }
  func.func @transform_2(%arg0: i32) -> (i32, i32) {
    %c0_i32 = arith.constant 0 : i32
    %c0_i32_0 = arith.constant 0 : i32
    %c0_i32_1 = arith.constant 0 : i32
    return %c0_i32, %c0_i32_0 : i32, i32
  }
  func.func @transform_3(%arg0: i32) -> (i32, i32) {
    %c0_i32 = arith.constant 0 : i32
    %c0_i32_0 = arith.constant 0 : i32
    %c0_i32_1 = arith.constant 0 : i32
    return %c0_i32, %c0_i32_0 : i32, i32
  }
  func.func @transform_4(%arg0: i32) -> (i32, i32) {
    %c0_i32 = arith.constant 0 : i32
    %c0_i32_0 = arith.constant 0 : i32
    %c0_i32_1 = arith.constant 0 : i32
    return %c0_i32, %c0_i32_0 : i32, i32
  }
  func.func @transform_5(%arg0: i32) -> (i32, i32) {
    %c0_i32 = arith.constant 0 : i32
    %c0_i32_0 = arith.constant 0 : i32
    %c0_i32_1 = arith.constant 0 : i32
    return %c0_i32, %c0_i32_0 : i32, i32
  }
  func.func @transform_6(%arg0: i32) -> (i32, i32) {
    %c0_i32 = arith.constant 0 : i32
    %c0_i32_0 = arith.constant 0 : i32
    %c0_i32_1 = arith.constant 0 : i32
    return %c0_i32, %c0_i32_0 : i32, i32
  }
  func.func @transform_7(%arg0: i32) -> (i32, i32) {
    %c0_i32 = arith.constant 0 : i32
    %c0_i32_0 = arith.constant 0 : i32
    %c0_i32_1 = arith.constant 0 : i32
    return %c0_i32, %c0_i32_0 : i32, i32
  }
  func.func @transform_8(%arg0: i32) -> (i32, i32) {
    %c0_i32 = arith.constant 0 : i32
    %c0_i32_0 = arith.constant 0 : i32
    %c0_i32_1 = arith.constant 0 : i32
    return %c0_i32, %c0_i32_0 : i32, i32
  }
  func.func @transform_9(%arg0: i32) -> (i32, i32) {
    %c0_i32 = arith.constant 0 : i32
    %c0_i32_0 = arith.constant 0 : i32
    %c0_i32_1 = arith.constant 0 : i32
    return %c0_i32, %c0_i32_0 : i32, i32
  }
  func.func @transform_10(%arg0: i32) -> (i32, i32) {
    %c0_i32 = arith.constant 0 : i32
    %c0_i32_0 = arith.constant 0 : i32
    %c0_i32_1 = arith.constant 0 : i32
    return %c0_i32, %c0_i32_0 : i32, i32
  }
  func.func @transform_11(%arg0: i32) -> (i32, i32) {
    %c0_i32 = arith.constant 0 : i32
    %c0_i32_0 = arith.constant 0 : i32
    %c0_i32_1 = arith.constant 0 : i32
    return %c0_i32, %c0_i32_0 : i32, i32
  }
  func.func @transform_12(%arg0: i32) -> (i32, i32) {
    %c0_i32 = arith.constant 0 : i32
    %c0_i32_0 = arith.constant 0 : i32
    %c0_i32_1 = arith.constant 0 : i32
    return %c0_i32, %c0_i32_0 : i32, i32
  }
  func.func @transform_13(%arg0: i32) -> (i32, i32) {
    %c0_i32 = arith.constant 0 : i32
    %c0_i32_0 = arith.constant 0 : i32
    %c0_i32_1 = arith.constant 0 : i32
    return %c0_i32, %c0_i32_0 : i32, i32
  }
  func.func @transform_14(%arg0: i32) -> (i32, i32) {
    %c0_i32 = arith.constant 0 : i32
    %c0_i32_0 = arith.constant 0 : i32
    %c0_i32_1 = arith.constant 0 : i32
    return %c0_i32, %c0_i32_0 : i32, i32
  }
  func.func @transform_15(%arg0: i32) -> (i32, i32) {
    %c0_i32 = arith.constant 0 : i32
    %c0_i32_0 = arith.constant 0 : i32
    return %c0_i32, %arg0 : i32, i32
  }
}

</mosaic_0001>

<bundles_post_ra>
// kernel: tpu_custom_call.1
= control target key start
LH: loop header
LB: loop body
LE: loop exit
PB: predicated region body
PF: predicated region fallthrough
CT: control target
= control target key end

     0   :  { %s2390_s0 = inlined_call_operand.vmem [shape: f32[16,256], index: 0, kind: input, shape index: {}]   ;;  %s2391_s1 = inlined_call_operand.vmem [shape: f32[32,16], index: 1, kind: input, shape index: {}]   ;;  %s2392_s2 = inlined_call_operand.vmem [shape: f32[32,1], index: 2, kind: input, shape index: {}]   ;;  %s2393_s3 = inlined_call_operand.vmem [shape: f32[32,32], index: 3, kind: input, shape index: {}]   ;;  %s2394_s4 = inlined_call_operand.vmem [shape: f32[32,1], index: 4, kind: input, shape index: {}]   ;;  %s2395_s5 = inlined_call_operand.vmem [shape: f32[32,64], index: 5, kind: input, shape index: {}]   ;;  %s2396_s6 = inlined_call_operand.vmem [shape: f32[32,1], index: 6, kind: input, shape index: {}]   ;;  %s2397_s7 = inlined_call_operand.vmem [shape: f32[32,96], index: 7, kind: input, shape index: {}]   ;;  %s2398_s8 = inlined_call_operand.vmem [shape: f32[32,1], index: 8, kind: input, shape index: {}]   ;;  %s2399_s9 = inlined_call_operand.vmem [shape: f32[32,128], index: 9, kind: input, shape index: {}]   ;;  %s2400_s10 = inlined_call_operand.vmem [shape: f32[32,1], index: 10, kind: input, shape index: {}]   ;;  %s2401_s11 = inlined_call_operand.vmem [shape: f32[32,160], index: 11, kind: input, shape index: {}]   ;;  %s2402_s12 = inlined_call_operand.vmem [shape: f32[32,1], index: 12, kind: input, shape index: {}]   ;;  %s2403_s13 = inlined_call_operand.vmem [shape: f32[8,32], index: 13, kind: input, shape index: {}]   ;;  %s2404_s14 = inlined_call_operand.vmem [shape: f32[8,1], index: 14, kind: input, shape index: {}]   ;;  %s2405_s15 = inlined_call_operand.hbm [shape: f32[8,256], index: 15, kind: output, shape index: {}]  }
   0x1   :  { %2409 = sst [smem:[#allocation10_spill]] %s2390_s0 }
   0x2   :  { %2410 = sst [smem:[#allocation11_spill]] %s2391_s1 }
   0x3   :  { %2411 = sst [smem:[#allocation12_spill]] %s2392_s2 }
   0x4   :  { %20 = vsyncpa [#allocation5], 0 }
   0x5   :  { %22 = vsyncpa [#allocation5 + $0x1], 0  ;;  %s1896_s18 = smov 0   ;;  %s1898_s19 = smov 0  }
   0x6   :  { %s1900_s20 = smov 0   ;;  %s1902_s21 = smov 0  }
   0x7 LB: > { %2412 = sst [smem:[#allocation7_spill]] %s1805_s19  ;;  %s2406_s22 = sadd.s32 4294967295, %s1813_s21   ;;  %s1813_s21 = sphi %s1902_s21, %s2424_s21   ;;  %s1809_s20 = sphi %s1900_s20, %s2423_s20   ;;  %s1805_s19 = sphi %s1898_s19, %s2422_s19   ;;  %s1801_s18 = sphi %s1896_s18, %s2421_s18  }
   0x8   : > { %2413 = sst [smem:[#allocation8_spill]] %s1809_s20  ;;  %s1655_s23 = sadd.s32 4294967294, %s1813_s21  }
   0x9   : > { %s1919_s24 = sadd.s32 1, %s1813_s21   ;;  %s35_s25 = sadd.s32 1, %s1809_s20 }
   0xa   : > { %s32_s26 = ssub.s32 %s1813_s21, %s1919_s24  ;;  %p42_p0 = scmp.ne.s32.totalorder %s1809_s20, %s1805_s19 }
   0xb   : > { %p33_p1 = scmp.eq.s32.totalorder %s32_s26, 0  ;;  %p43_p2 = scmp.eq.s32.totalorder %s1813_s21, 0 }
   0xc   : > { %p366_p3 = scmp.eq.s32.totalorder %s2406_s22, 1  ;;  %p371_p4 = scmp.ne.s32.totalorder %s1805_s19, %s1801_s18 }
   0xd   : > { %s1932_s27 = scalar_select %p33_p1, %s1809_s20, %s35_s25  }
   0xe   : > { %p44_p5 = por %p43_p2, %p42_p0  ;;  %p1934_p6 = por %p366_p3, %p42_p0 }
   0xf   : > { %2414 = sst [smem:[#allocation9_spill]] %s1932_s27  ;;  %p372_p7 = scmp.eq.s32.totalorder %s1655_s23, 1 }
  0x10   : > { %p1657_p9 = scmp.ge.s32.totalorder %s1813_s21, 2 }
  0x11   : > { %p1938_p8 = por %p372_p7, %p371_p4 }
  0x12   : > { %430 = sbr.rel (%p1657_p9) target bundleno = 35 (0x23), region = 72 }
  0x17   : > { %433 = sbr.rel (!%p44_p5) target bundleno = 35 (0x23), region = 76  ;;  %s435_s30 = sand.u32 (%p44_p5), 1, %s1809_s20  }
  0x18   : > { %s1659_s16 = sshll.u32 (%p44_p5), %s1813_s21, 3  ;;  %s1658_s17 = sshll.u32 (%p44_p5), %s435_s30, 4 }
  0x19   : > { %s2417_s0 = sld [smem:[#allocation10_spill]] (%p44_p5)  ;;  %s437_s23 = scalar_lea.vmem (%p44_p5), [#allocation3], %s1658_s17 }
  0x1f   : > { %s439_s22 = scalar_lea.vmem %s2417_s0, %s1659_s16 }
  0x20   : > { %v470_v0 = vld [vmem:[%s439_s22] sm:$0xff]  ;;  %v472_v1 = vld [vmem:[%s439_s22 + $0x10] sm:$0xff] }
  0x21   : > { %471 = vst [vmem:[%s437_s23] sm:$0xff] %v470_v0 }
  0x22   : > { %473 = vst [vmem:[%s437_s23 + $0x8] sm:$0xff] %v472_v1 }
  0x23 PF: > { %p1660_p10 = scmp.ge.s32.totalorder %s1813_s21, 1  ;;  %p478_p11 = scmp.lt.s32.totalorder %s1813_s21, 3 }
  0x25   : > { %p479_p12 = pnand %p1660_p10, %p478_p11 }
  0x26   : > { %s2418_s2 = sld [smem:[#allocation12_spill]] (!%p479_p12)  ;;  %s1959_s22 = sand.u32 (!%p479_p12), 1, %s1805_s19  }
  0x27   : > { %482 = sbr.rel (%p479_p12) target bundleno = 2068 (0x814), region = 114  ;;  %s1661_s17 = sshll.u32 (!%p479_p12), %s1959_s22, 4 }
  0x28   : > { %s487_s25 = scalar_lea.vmem (!%p479_p12), [#allocation3], %s1661_s17  ;;  %s2419_s1 = sld [smem:[#allocation11_spill]] (!%p479_p12) }
  0x29   : > { %s1662_s30 = sshll.u32 (!%p479_p12), %s1959_s22, 3  ;;  %s2420_s16 = sadd.s32 (!%p479_p12), 4294967295, %s1813_s21  }
  0x2a   : > { %s1701_s17 = sshll.u32 (!%p479_p12), %s2420_s16, 3  ;;  %s531_s20 = scalar_lea.vmem (!%p479_p12), [#allocation4], %s1662_s30 }
  0x2b   : > { %s1585_s19 = scalar_lea.hbm (!%p479_p12), %s2405_s15, %s1701_s17  ;;  %s1587_s27 = sshll.u32 (!%p479_p12), %s531_s20, 4  ;;  %s1588_s27 = int_to_ptr.vmem [resolvable:$true] %s1587_s27 }
  0x2c   : > { %v541_v2 = vld [vmem:[%s2418_s2 + $0x18] sm:$0xff]  ;;  %v539_v3 = vld [vmem:[%s2418_s2 + $0x8] sm:$0xff]  ;;  %v1815_v4 = vmov 0   ;;  %v536_v6 = vld [vmem:[%s487_s25] sm:$0xff]  ;;  %vm562_vm0 = vcmask 130048   ;;  %vm644_vm1 = vcmask 261120  }
  0x2d   : > { %1749 = vset.pattern.permute.xlu1 %v1815_v4  ;;  %1748 = vset.pattern.permute.xlu0 %v1815_v4  ;;  %v537_v5 = vld [vmem:[%s487_s25 + $0x8] sm:$0xff]  ;;  %v540_v8 = vld [vmem:[%s2418_s2 + $0x10] sm:$0xff]  ;;  %v538_v9 = vld [vmem:[%s2418_s2] sm:$0xff]  ;;  %vm730_vm2 = vcmask 523264   ;;  %vm820_vm3 = vcmask 785408   ;;  %s1575_s26 = scalar_lea.sflag [#allocation5], %s1959_s22 }
  0x2e   : > { %559 = vperm.xlu0 %1748, %v541_v2   ;;  %549 = vperm.xlu1 %1749, %v539_v3   ;;  %v532_v7 = vld [vmem:[%s2419_s1] sm:$0xff]  ;;  %v533_v10 = vld [vmem:[%s2419_s1 + $0x8] sm:$0xff]  ;;  %v534_v13 = vld [vmem:[%s2419_s1 + $0x10] sm:$0xff]  ;;  %s1771_s30 = scalar_lea.hbm %s2405_s15, 16 }
  0x2f   : > { %1750 = vset.pattern.permute.xlu2 %v1815_v4  ;;  %589 = vmatpush.msra.mxu0 %v537_v5  ;;  %v621_v11 = vld [vmem:[%s2394_s4 + $0x8] sm:$0xff]  ;;  %v620_v12 = vld [vmem:[%s2394_s4] sm:$0xff]  ;;  %v708_v14 = vld [vmem:[%s2396_s6 + $0x10] sm:$0xff] }
  0x30   : > { %v707_v15 = vld [vmem:[%s2396_s6 + $0x8] sm:$0xff]  ;;  %v1092_v16 = vld [vmem:[%s2394_s4 + $0x18] sm:$0xff]  ;;  %v798_v19 = vld [vmem:[%s2398_s8 + $0x10] sm:$0xff] }
  0x31   : > { %590 = vmatpush.msra.mxu0 %v536_v6  ;;  %641 = vperm.xlu2 %1750, %v1092_v16   ;;  %v535_v17 = vld [vmem:[%s2419_s1 + $0x18] sm:$0xff]  ;;  %v1091_v20 = vld [vmem:[%s2394_s4 + $0x10] sm:$0xff]  ;;  %v796_v21 = vld [vmem:[%s2398_s8] sm:$0xff]  ;;  %s1589_s1 = sshll.u32 %s1585_s19, 4  ;;  %s1590_s1 = int_to_ptr.hbm [resolvable:$true] %s1589_s1 }
  0x32   : > { %1663 = vmatmul.msk.f32.vlgmr.msra.gmra.mxu0 %vm562_vm0, %v532_v7  ;;  %v799_v18 = vld [vmem:[%s2398_s8 + $0x18] sm:$0xff]  ;;  %v891_v24 = vld [vmem:[%s2400_s10 + $0x8] sm:$0xff]  ;;  %v890_v25 = vld [vmem:[%s2400_s10] sm:$0xff]  ;;  %s1765_s23 = sshra.s32 %s1590_s1, 4  ;;  %s1766_s23 = int_to_ptr.hbm [resolvable:$true] %s1765_s23 }
  0x33   : > { %v893_v22 = vld [vmem:[%s2400_s10 + $0x18] sm:$0xff]  ;;  %v1174_v26 = vld [vmem:[%s2396_s6] sm:$0xff]  ;;  %v981_v27 = vld [vmem:[%s2402_s12 + $0x10] sm:$0xff]  ;;  %s1767_s2 = scalar_lea.hbm %s1766_s23, 8  ;;  %p1772_p2 = scmp.lt.s32.totalorder %s1766_s23, %s2405_s15 }
  0x34   : > { %v1177_v23 = vld [vmem:[%s2396_s6 + $0x18] sm:$0xff]  ;;  %v980_v28 = vld [vmem:[%s2402_s12 + $0x8] sm:$0xff]  ;;  %v1358_v30 = vld [vmem:[%s2400_s10 + $0x10] sm:$0xff]  ;;  %p1768_p13 = scmp.ne.s32.totalorder %s1766_s23, %s1767_s2  ;;  %p1773_p3 = scmp.lt.s32.totalorder %s1771_s30, %s1767_s2 }
  0x35   : > { %v1264_v29 = vld [vmem:[%s2398_s8 + $0x8] sm:$0xff]  ;;  %v1448_v31 = vld [vmem:[%s2402_s12 + $0x18] sm:$0xff]  ;;  %v1445_v32 = vld [vmem:[%s2402_s12] sm:$0xff] }
  0x36   : > { %554 = vperm.xlu0 %1748, %v540_v8   ;;  %544 = vperm.xlu1 %1749, %v538_v9   ;;  %v2058_v49 = vld [vmem:[%s2393_s3] sm:$0xff]  ;;  %v2066_v50 = vld [vmem:[%s2393_s3 + $0x8] sm:$0xff]  ;;  %v2073_v51 = vld [vmem:[%s2393_s3 + $0x10] sm:$0xff]  ;;  %p1769_p0 = pnand %p1768_p13, %p1934_p6  ;;  %p1774_p4 = por %p1773_p3, %p1772_p2 }
  0x37   : > { %v1544_v52 = vld [vmem:[%s2404_s14] sm:$0xff]  ;;  %v2083_v53 = vld [vmem:[%s2393_s3 + $0x18] sm:$0xff]  ;;  %v2113_v7 = vld [vmem:[%s2395_s5 + $0x8] sm:$0xff] }
  0x38   : > { %v2105_v6 = vld [vmem:[%s2395_s5] sm:$0xff]  ;;  %v2120_v8 = vld [vmem:[%s2395_s5 + $0x10] sm:$0xff]  ;;  %v2127_v9 = vld [vmem:[%s2395_s5 + $0x18] sm:$0xff]  ;;  %p1770_p1 = pneg %p1769_p0 }
  0x39   : > { %636 = vperm.xlu2 %1750, %v1091_v20  }
  0x3a   : > { %1664 = vmatmul.msk.f32.gmra.mxu0 %vm562_vm0, %v533_v10  ;;  %p1775_p5 = pnand %p1774_p4, %p1770_p1 }
  0x3e   : > { %631 = vperm.xlu0 %1748, %v621_v11   ;;  %626 = vperm.xlu1 %1749, %v620_v12  }
  0x41   : > { %727 = vperm.xlu2 %1750, %v1177_v23  }
  0x42   : > { %1665 = vmatmul.msk.f32.gmra.mxu0 %vm562_vm0, %v534_v13 }
  0x46   : > { %722 = vperm.xlu0 %1748, %v708_v14   ;;  %717 = vperm.xlu1 %1749, %v707_v15  }
  0x49   : > { %712 = vperm.xlu2 %1750, %v1174_v26  }
  0x4a   : > { %1666 = vmatmul.msk.f32.gmra.mxu0 %vm562_vm0, %v535_v17 }
  0x4e   : > { %817 = vperm.xlu0 %1748, %v799_v18   ;;  %812 = vperm.xlu1 %1749, %v798_v19  }
  0x51   : > { %807 = vperm.xlu2 %1750, %v1264_v29  }
  0x56   : > { %802 = vperm.xlu0 %1748, %v796_v21   ;;  %911 = vperm.xlu1 %1749, %v893_v22  }
  0x59   : > { %906 = vperm.xlu2 %1750, %v1358_v30  }
  0x5e   : > { %901 = vperm.xlu0 %1748, %v891_v24   ;;  %896 = vperm.xlu1 %1749, %v890_v25  }
  0x61   : > { %1000 = vperm.xlu2 %1750, %v1448_v31  }
  0x66   : > { %995 = vperm.xlu0 %1748, %v981_v27   ;;  %990 = vperm.xlu1 %1749, %v980_v28  }
  0x69   : > { %985 = vperm.xlu2 %1750, %v1445_v32  }
  0x6e   : > { %1110 = vperm.xlu0 %1748, %v1092_v16   ;;  %1105 = vperm.xlu1 %1749, %v1091_v20  }
  0x71   : > { %1100 = vperm.xlu2 %1750, %v621_v11  }
  0x76   : > { %1095 = vperm.xlu0 %1748, %v620_v12   ;;  %1195 = vperm.xlu1 %1749, %v1177_v23  }
  0x79   : > { %1190 = vperm.xlu2 %1750, %v708_v14  }
  0x7e   : > { %1185 = vperm.xlu0 %1748, %v707_v15   ;;  %1180 = vperm.xlu1 %1749, %v1174_v26   ;;  %v2141_v26 = vld [vmem:[%s2397_s7] sm:$0xff] }
  0x81   : > { %1284 = vperm.xlu2 %1750, %v799_v18  }
  0x86   : > { %1279 = vperm.xlu0 %1748, %v798_v19   ;;  %1274 = vperm.xlu1 %1749, %v1264_v29   ;;  %v2163_v29 = vld [vmem:[%s2397_s7 + $0x18] sm:$0xff] }
  0x89   : > { %1269 = vperm.xlu2 %1750, %v796_v21  }
  0x8b   : > { %v642_v56 = vpop.permute.xlu2 %641 }
  0x8e   : > { %1377 = vperm.xlu0 %1748, %v893_v22   ;;  %1372 = vperm.xlu1 %1749, %v1358_v30  }
  0x91   : > { %1367 = vperm.xlu2 %1750, %v891_v24  }
  0x93   : > { %v637_v58 = vpop.permute.xlu2 %636 }
  0x96   : > { %1362 = vperm.xlu0 %1748, %v890_v25   ;;  %1466 = vperm.xlu1 %1749, %v1448_v31  }
  0x99   : > { %1461 = vperm.xlu2 %1750, %v981_v27   ;;  %v2149_v27 = vld [vmem:[%s2397_s7 + $0x8] sm:$0xff] }
  0x9b   : > { %v728_v13 = vpop.permute.xlu2 %727 }
  0x9e   : > { %1456 = vperm.xlu0 %1748, %v980_v28   ;;  %1451 = vperm.xlu1 %1749, %v1445_v32   ;;  %v2156_v28 = vld [vmem:[%s2397_s7 + $0x10] sm:$0xff] }
  0xa0   : > { %v560_v35 = vpop.permute.xlu0 %559  ;;  %v550_v37 = vpop.permute.xlu1 %549 }
  0xa1   : > { %1547 = vperm.xlu2 %1750, %v1544_v52  }
  0xa3   : > { %v713_v21 = vpop.permute.xlu2 %712 }
  0xa8   : > { %v555_v38 = vpop.permute.xlu0 %554  ;;  %v545_v44 = vpop.permute.xlu1 %544 }
  0xaf   : > { %v592_v33 = vpop.f32.mrf.mxu0 }
  0xb0   : > { %v593_v45 = vadd.f32 %v592_v33, %v545_v44  ;;  %v632_v62 = vpop.permute.xlu0 %631  ;;  %v627_v1 = vpop.permute.xlu1 %626 }
  0xb2   : > { %v2052_v48 = vmax.f32 %v593_v45, 0.0 }
  0xb7   : > { %v595_v34 = vpop.f32.mrf.mxu0 }
  0xb8   : > { %v596_v42 = vadd.f32 %v595_v34, %v550_v37  ;;  %v723_v14 = vpop.permute.xlu0 %722  ;;  %v718_v18 = vpop.permute.xlu1 %717 }
  0xba   : > { %v2049_v47 = vmax.f32 %v596_v42, 0.0 }
  0xbf   : > { %v598_v36 = vpop.f32.mrf.mxu0 }
  0xc0   : > { %v599_v40 = vadd.f32 %v598_v36, %v555_v38  ;;  %v818_v33 = vpop.permute.xlu0 %817  ;;  %v813_v34 = vpop.permute.xlu1 %812 }
  0xc1   : > { %v808_v38 = vpop.permute.xlu2 %807 }
  0xc2   : > { %v2046_v46 = vmax.f32 %v599_v40, 0.0 }
  0xc7   : > { %v601_v39 = vpop.f32.mrf.mxu0 }
  0xc8   : > { %v602_v41 = vadd.f32 %v601_v39, %v560_v35 }
  0xca   : > { %v2044_v43 = vmax.f32 %v602_v41, 0.0  ;;  %v803_v41 = vpop.permute.xlu0 %802 }
  0xcc   : > { %669 = vmatpush.msra.mxu1 %v2044_v43 }
  0xce   : > { %670 = vmatpush.msra.mxu1 %v2046_v46 }
  0xd0   : > { %671 = vmatpush.msra.mxu1 %v2049_v47 }
  0xd2   : > { %672 = vmatpush.msra.mxu1 %v2052_v48 }
  0xd3   : > { %1667 = vmatmul.msk.f32.vlgmr.msra.gmra.mxu1 %vm644_vm1, %v2058_v49 }
  0xdb   : > { %1668 = vmatmul.msk.f32.gmra.mxu1 %vm644_vm1, %v2066_v50 }
  0xe3   : > { %1669 = vmatmul.msk.f32.gmra.mxu1 %vm644_vm1, %v2073_v51 }
  0xeb   : > { %1670 = vmatmul.msk.f32.gmra.mxu1 %vm644_vm1, %v2083_v53 }
 0x150   : > { %v674_v54 = vpop.f32.mrf.mxu1 }
 0x151   : > { %v675_v2 = vadd.f32 %v674_v54, %v627_v1  ;;  %v2184_v54 = vld [vmem:[%s2399_s9] sm:$0xff] }
 0x153   : > { %v2095_v5 = vmax.f32 %v675_v2, 0.0  ;;  %v902_v2 = vpop.permute.xlu0 %901 }
 0x158   : > { %v677_v55 = vpop.f32.mrf.mxu1 }
 0x159   : > { %v678_v63 = vadd.f32 %v677_v55, %v632_v62  ;;  %v2189_v55 = vld [vmem:[%s2401_s11] sm:$0xff]  ;;  %v907_v62 = vpop.permute.xlu2 %906 }
 0x15b   : > { %v2092_v4 = vmax.f32 %v678_v63, 0.0 }
 0x160   : > { %v680_v57 = vpop.f32.mrf.mxu1 }
 0x161   : > { %v681_v60 = vadd.f32 %v680_v57, %v637_v58  ;;  %v2227_v57 = vld [vmem:[%s2401_s11 + $0x30] sm:$0xff] }
 0x163   : > { %v2089_v3 = vmax.f32 %v681_v60, 0.0 }
 0x168   : > { %v683_v59 = vpop.f32.mrf.mxu1 }
 0x169   : > { %v684_v61 = vadd.f32 %v683_v59, %v642_v56  ;;  %v2222_v56 = vld [vmem:[%s2399_s9 + $0x18] sm:$0xff] }
 0x16b   : > { %v2087_v0 = vmax.f32 %v684_v61, 0.0  ;;  %v912_v61 = vpop.permute.xlu1 %911 }
 0x16d   : > { %751 = vmatpush.msra.mxu2 %v2087_v0 }
 0x16f   : > { %752 = vmatpush.msra.mxu2 %v2089_v3 }
 0x171   : > { %753 = vmatpush.msra.mxu2 %v2092_v4 }
 0x173   : > { %754 = vmatpush.msra.mxu2 %v2095_v5 }
 0x175   : > { %755 = vmatpush.msra.mxu2 %v2044_v43 }
 0x177   : > { %756 = vmatpush.msra.mxu2 %v2046_v46 }
 0x179   : > { %757 = vmatpush.msra.mxu2 %v2049_v47 }
 0x17b   : > { %758 = vmatpush.msra.mxu2 %v2052_v48 }
 0x17c   : > { %1671 = vmatmul.msk.f32.vlgmr.msra.gmra.mxu2 %vm730_vm2, %v2105_v6 }
 0x184   : > { %1672 = vmatmul.msk.f32.gmra.mxu2 %vm730_vm2, %v2113_v7 }
 0x18c   : > { %1673 = vmatmul.msk.f32.gmra.mxu2 %vm730_vm2, %v2120_v8 }
 0x194   : > { %1674 = vmatmul.msk.f32.gmra.mxu2 %vm730_vm2, %v2127_v9 }
 0x1ff   : > { %v760_v10 = vpop.f32.mrf.mxu2 }
 0x200   : > { %v761_v22 = vadd.f32 %v760_v10, %v713_v21 }
 0x202   : > { %v772_v25 = vmax.f32 %v761_v22, 0.0 }
 0x207   : > { %v763_v11 = vpop.f32.mrf.mxu2 }
 0x208   : > { %v764_v19 = vadd.f32 %v763_v11, %v718_v18 }
 0x20a   : > { %v773_v24 = vmax.f32 %v764_v19, 0.0 }
 0x20f   : > { %v766_v12 = vpop.f32.mrf.mxu2 }
 0x210   : > { %v767_v16 = vadd.f32 %v766_v12, %v723_v14  ;;  %v2234_v14 = vld [vmem:[%s2401_s11 + $0x8] sm:$0xff] }
 0x212   : > { %v774_v23 = vmax.f32 %v767_v16, 0.0  ;;  %v2248_v16 = vld [vmem:[%s2401_s11 + $0x28] sm:$0xff] }
 0x217   : > { %v769_v15 = vpop.f32.mrf.mxu2 }
 0x218   : > { %v770_v17 = vadd.f32 %v769_v15, %v728_v13  ;;  %v2241_v15 = vld [vmem:[%s2401_s11 + $0x18] sm:$0xff] }
 0x21a   : > { %v775_v20 = vmax.f32 %v770_v17, 0.0  ;;  %v2255_v17 = vld [vmem:[%s2401_s11 + $0x38] sm:$0xff] }
 0x21c   : > { %837 = vmatpush.msra.mxu3 %v775_v20 }
 0x21e   : > { %838 = vmatpush.msra.mxu3 %v774_v23 }
 0x220   : > { %839 = vmatpush.msra.mxu3 %v773_v24 }
 0x222   : > { %840 = vmatpush.msra.mxu3 %v772_v25 }
 0x224   : > { %841 = vmatpush.msra.mxu3 %v2087_v0 }
 0x226   : > { %842 = vmatpush.msra.mxu3 %v2089_v3 }
 0x228   : > { %843 = vmatpush.msra.mxu3 %v2092_v4 }
 0x22a   : > { %844 = vmatpush.msra.mxu3 %v2095_v5 }
 0x22c   : > { %845 = vmatpush.msra.mxu3 %v2044_v43 }
 0x22e   : > { %846 = vmatpush.msra.mxu3 %v2046_v46 }
 0x230   : > { %847 = vmatpush.msra.mxu3 %v2049_v47 }
 0x232   : > { %848 = vmatpush.msra.mxu3 %v2052_v48 }
 0x233   : > { %1675 = vmatmul.msk.f32.vlgmr.msra.gmra.mxu3 %vm820_vm3, %v2141_v26 }
 0x23b   : > { %1676 = vmatmul.msk.f32.gmra.mxu3 %vm820_vm3, %v2149_v27 }
 0x243   : > { %1677 = vmatmul.msk.f32.gmra.mxu3 %vm820_vm3, %v2156_v28 }
 0x24b   : > { %1678 = vmatmul.msk.f32.gmra.mxu3 %vm820_vm3, %v2163_v29 }
 0x2b6   : > { %v850_v30 = vpop.f32.mrf.mxu3 }
 0x2b7   : > { %v851_v42 = vadd.f32 %v850_v30, %v803_v41  ;;  %v996_v30 = vpop.permute.xlu0 %995 }
 0x2b9   : > { %v862_v52 = vmax.f32 %v851_v42, 0.0 }
 0x2be   : > { %v853_v31 = vpop.f32.mrf.mxu3 }
 0x2bf   : > { %v854_v39 = vadd.f32 %v853_v31, %v808_v38 }
 0x2c1   : > { %v863_v45 = vmax.f32 %v854_v39, 0.0 }
 0x2c6   : > { %v856_v32 = vpop.f32.mrf.mxu3 }
 0x2c7   : > { %v857_v36 = vadd.f32 %v856_v32, %v813_v34 }
 0x2c9   : > { %v864_v44 = vmax.f32 %v857_v36, 0.0 }
 0x2ce   : > { %v859_v35 = vpop.f32.mrf.mxu3 }
 0x2cf   : > { %v860_v37 = vadd.f32 %v859_v35, %v818_v33 }
 0x2d1   : > { %v865_v40 = vmax.f32 %v860_v37, 0.0 }
 0x2d3   : > { %914 = vmatpush.msrb.mxu0 %v865_v40  ;;  %1015 = vmatpush.msrb.mxu1 %v865_v40 }
 0x2d5   : > { %915 = vmatpush.msrb.mxu0 %v864_v44  ;;  %1016 = vmatpush.msrb.mxu1 %v864_v44 }
 0x2d7   : > { %916 = vmatpush.msrb.mxu0 %v863_v45  ;;  %1017 = vmatpush.msrb.mxu1 %v863_v45 }
 0x2d9   : > { %917 = vmatpush.msrb.mxu0 %v862_v52  ;;  %1018 = vmatpush.msrb.mxu1 %v862_v52 }
 0x2db   : > { %918 = vmatpush.msrb.mxu0 %v775_v20  ;;  %1019 = vmatpush.msrb.mxu1 %v775_v20 }
 0x2dd   : > { %919 = vmatpush.msrb.mxu0 %v774_v23  ;;  %1020 = vmatpush.msrb.mxu1 %v774_v23  ;;  %v1001_v23 = vpop.permute.xlu2 %1000 }
 0x2df   : > { %920 = vmatpush.msrb.mxu0 %v773_v24  ;;  %1021 = vmatpush.msrb.mxu1 %v773_v24 }
 0x2e1   : > { %921 = vmatpush.msrb.mxu0 %v772_v25  ;;  %1022 = vmatpush.msrb.mxu1 %v772_v25 }
 0x2e3   : > { %922 = vmatpush.msrb.mxu0 %v2087_v0  ;;  %1023 = vmatpush.msrb.mxu1 %v2087_v0 }
 0x2e5   : > { %923 = vmatpush.msrb.mxu0 %v2089_v3  ;;  %1024 = vmatpush.msrb.mxu1 %v2089_v3  ;;  %v986_v38 = vpop.permute.xlu2 %985 }
 0x2e7   : > { %924 = vmatpush.msrb.mxu0 %v2092_v4  ;;  %1025 = vmatpush.msrb.mxu1 %v2092_v4 }
 0x2e9   : > { %925 = vmatpush.msrb.mxu0 %v2095_v5  ;;  %1026 = vmatpush.msrb.mxu1 %v2095_v5  ;;  %v897_v5 = vpop.permute.xlu1 %896 }
 0x2eb   : > { %926 = vmatpush.msrb.mxu0 %v2044_v43  ;;  %1027 = vmatpush.msrb.mxu1 %v2044_v43  ;;  %v2198_v43 = vld [vmem:[%s2399_s9 + $0x8] sm:$0xff] }
 0x2ed   : > { %927 = vmatpush.msrb.mxu0 %v2046_v46  ;;  %1028 = vmatpush.msrb.mxu1 %v2046_v46  ;;  %v2203_v46 = vld [vmem:[%s2401_s11 + $0x10] sm:$0xff] }
 0x2ef   : > { %928 = vmatpush.msrb.mxu0 %v2049_v47  ;;  %1029 = vmatpush.msrb.mxu1 %v2049_v47  ;;  %v2210_v47 = vld [vmem:[%s2399_s9 + $0x10] sm:$0xff] }
 0x2f1   : > { %929 = vmatpush.msrb.mxu0 %v2052_v48  ;;  %1030 = vmatpush.msrb.mxu1 %v2052_v48  ;;  %v2215_v48 = vld [vmem:[%s2401_s11 + $0x20] sm:$0xff]  ;;  %v991_v33 = vpop.permute.xlu1 %990 }
 0x2f2   : > { %930 = vmatmul.f32.vlgmr.msrb.gmra.mxu0 %v2184_v54  ;;  %1031 = vmatmul.f32.vlgmr.msrb.gmra.mxu1 %v2189_v55 }
 0x2fa   : > { %933 = vmatmul.f32.gmra.mxu0 %v2198_v43  ;;  %1034 = vmatmul.f32.gmra.mxu1 %v2203_v46 }
 0x302   : > { %936 = vmatmul.f32.gmra.mxu0 %v2210_v47  ;;  %1037 = vmatmul.f32.gmra.mxu1 %v2215_v48 }
 0x30a   : > { %939 = vmatmul.f32.gmra.mxu0 %v2222_v56  ;;  %1040 = vmatmul.f32.gmra.mxu1 %v2227_v57 }
 0x36f   : > { %v931_v58 = vpop.f32.mrf.mxu0  ;;  %v1032_v18 = vpop.f32.mrf.mxu1 }
 0x370   : > { %v932_v10 = vadd.f32 %v931_v58, %v897_v5  ;;  %v1033_v39 = vadd.f32 %v1032_v18, %v986_v38 }
 0x372   : > { %v943_v13 = vmax.f32 %v932_v10, 0.0 }
 0x377   : > { %v934_v59 = vpop.f32.mrf.mxu0  ;;  %v1035_v19 = vpop.f32.mrf.mxu1 }
 0x378   : > { %v935_v3 = vadd.f32 %v934_v59, %v902_v2  ;;  %v1036_v35 = vadd.f32 %v1035_v19, %v991_v33  ;;  %v1101_v2 = vpop.permute.xlu2 %1100 }
 0x37a   : > { %v944_v12 = vmax.f32 %v935_v3, 0.0 }
 0x37f   : > { %v937_v60 = vpop.f32.mrf.mxu0  ;;  %v1038_v22 = vpop.f32.mrf.mxu1 }
 0x380   : > { %v938_v0 = vadd.f32 %v937_v60, %v907_v62  ;;  %v1039_v31 = vadd.f32 %v1038_v22, %v996_v30  ;;  %v1106_v62 = vpop.permute.xlu1 %1105  ;;  %v1191_v18 = vpop.permute.xlu2 %1190 }
 0x382   : > { %v945_v11 = vmax.f32 %v938_v0, 0.0 }
 0x387   : > { %v940_v63 = vpop.f32.mrf.mxu0  ;;  %v1041_v25 = vpop.f32.mrf.mxu1 }
 0x388   : > { %v941_v1 = vadd.f32 %v940_v63, %v912_v61  ;;  %v1042_v32 = vadd.f32 %v1041_v25, %v1001_v23  ;;  %v1111_v61 = vpop.permute.xlu0 %1110  ;;  %v1285_v33 = vpop.permute.xlu2 %1284 }
 0x38a   : > { %v946_v4 = vmax.f32 %v941_v1, 0.0 }
 0x38c   : > { %1056 = vmatpush.msrb.mxu2 %v946_v4 }
 0x38e   : > { %1057 = vmatpush.msrb.mxu2 %v945_v11 }
 0x390   : > { %1058 = vmatpush.msrb.mxu2 %v944_v12  ;;  %v1096_v4 = vpop.permute.xlu0 %1095 }
 0x392   : > { %1059 = vmatpush.msrb.mxu2 %v943_v13  ;;  %v1196_v13 = vpop.permute.xlu1 %1195 }
 0x393   : > { %1679 = vmatmul.msk.f32.vlgmr.msrb.gmra.mxu2 %vm644_vm1, %v2234_v14 }
 0x398   : > { %v1186_v22 = vpop.permute.xlu0 %1185 }
 0x39b   : > { %1680 = vmatmul.msk.f32.gmra.mxu2 %vm644_vm1, %v2241_v15 }
 0x3a3   : > { %1681 = vmatmul.msk.f32.gmra.mxu2 %vm644_vm1, %v2248_v16 }
 0x3ab   : > { %1682 = vmatmul.msk.f32.gmra.mxu2 %vm644_vm1, %v2255_v17 }
 0x416   : > { %v1061_v20 = vpop.f32.mrf.mxu2 }
 0x417   : > { %v1062_v42 = vadd.f32 %v1061_v20, %v1033_v39 }
 0x419   : > { %v2267_v52 = vmax.f32 %v1062_v42, 0.0 }
 0x41e   : > { %v1064_v21 = vpop.f32.mrf.mxu2 }
 0x41f   : > { %v1065_v40 = vadd.f32 %v1064_v21, %v1036_v35 }
 0x421   : > { %v2264_v45 = vmax.f32 %v1065_v40, 0.0  ;;  %v1270_v40 = vpop.permute.xlu2 %1269 }
 0x426   : > { %v1067_v24 = vpop.f32.mrf.mxu2 }
 0x427   : > { %v1068_v36 = vadd.f32 %v1067_v24, %v1039_v31  ;;  %v1181_v24 = vpop.permute.xlu1 %1180 }
 0x429   : > { %v2261_v44 = vmax.f32 %v1068_v36, 0.0 }
 0x42e   : > { %v1070_v34 = vpop.f32.mrf.mxu2 }
 0x42f   : > { %v1071_v37 = vadd.f32 %v1070_v34, %v1042_v32  ;;  %v1280_v34 = vpop.permute.xlu0 %1279  ;;  %v1275_v38 = vpop.permute.xlu1 %1274 }
 0x431   : > { %v2259_v41 = vmax.f32 %v1071_v37, 0.0 }
 0x433   : > { %1137 = vmatpush.msrb.mxu3 %v2259_v41 }
 0x435   : > { %1138 = vmatpush.msrb.mxu3 %v2261_v44 }
 0x437   : > { %1139 = vmatpush.msrb.mxu3 %v2264_v45 }
 0x439   : > { %1140 = vmatpush.msrb.mxu3 %v2267_v52 }
 0x43a   : > { %1683 = vmatmul.msk.f32.vlgmr.msrb.gmra.mxu3 %vm644_vm1, %v2058_v49 }
 0x442   : > { %1684 = vmatmul.msk.f32.gmra.mxu3 %vm644_vm1, %v2066_v50 }
 0x44a   : > { %1685 = vmatmul.msk.f32.gmra.mxu3 %vm644_vm1, %v2073_v51 }
 0x452   : > { %1686 = vmatmul.msk.f32.gmra.mxu3 %vm644_vm1, %v2083_v53 }
 0x4bd   : > { %v1142_v58 = vpop.f32.mrf.mxu3 }
 0x4be   : > { %v1143_v50 = vadd.f32 %v1142_v58, %v1096_v4  ;;  %v1373_v58 = vpop.permute.xlu1 %1372 }
 0x4c0   : > { %v2287_v53 = vmax.f32 %v1143_v50, 0.0 }
 0x4c5   : > { %v1145_v59 = vpop.f32.mrf.mxu3 }
 0x4c6   : > { %v1146_v3 = vadd.f32 %v1145_v59, %v1101_v2  ;;  %v1467_v2 = vpop.permute.xlu1 %1466 }
 0x4c8   : > { %v2284_v51 = vmax.f32 %v1146_v3, 0.0 }
 0x4cd   : > { %v1148_v60 = vpop.f32.mrf.mxu3 }
 0x4ce   : > { %v1149_v0 = vadd.f32 %v1148_v60, %v1106_v62  ;;  %v1368_v60 = vpop.permute.xlu2 %1367 }
 0x4d0   : > { %v2281_v5 = vmax.f32 %v1149_v0, 0.0 }
 0x4d5   : > { %v1151_v63 = vpop.f32.mrf.mxu3 }
 0x4d6   : > { %v1152_v1 = vadd.f32 %v1151_v63, %v1111_v61 }
 0x4d8   : > { %v2279_v49 = vmax.f32 %v1152_v1, 0.0 }
 0x4da   : > { %1218 = vmatpush.msra.mxu0 %v2279_v49 }
 0x4dc   : > { %1219 = vmatpush.msra.mxu0 %v2281_v5 }
 0x4de   : > { %1220 = vmatpush.msra.mxu0 %v2284_v51 }
 0x4e0   : > { %1221 = vmatpush.msra.mxu0 %v2287_v53 }
 0x4e2   : > { %1222 = vmatpush.msra.mxu0 %v2259_v41 }
 0x4e4   : > { %1223 = vmatpush.msra.mxu0 %v2261_v44 }
 0x4e6   : > { %1224 = vmatpush.msra.mxu0 %v2264_v45 }
 0x4e8   : > { %1225 = vmatpush.msra.mxu0 %v2267_v52 }
 0x4e9   : > { %1687 = vmatmul.msk.f32.vlgmr.msra.gmra.mxu0 %vm730_vm2, %v2105_v6 }
 0x4f1   : > { %1688 = vmatmul.msk.f32.gmra.mxu0 %vm730_vm2, %v2113_v7 }
 0x4f9   : > { %1689 = vmatmul.msk.f32.gmra.mxu0 %vm730_vm2, %v2120_v8 }
 0x501   : > { %1690 = vmatmul.msk.f32.gmra.mxu0 %vm730_vm2, %v2127_v9 }
 0x566   : > { %v1227_v10 = vpop.f32.mrf.mxu0 }
 0x567   : > { %v1228_v25 = vadd.f32 %v1227_v10, %v1181_v24  ;;  %v1452_v10 = vpop.permute.xlu1 %1451 }
 0x569   : > { %v1239_v8 = vmax.f32 %v1228_v25, 0.0 }
 0x56e   : > { %v1230_v11 = vpop.f32.mrf.mxu0 }
 0x56f   : > { %v1231_v23 = vadd.f32 %v1230_v11, %v1186_v22  ;;  %v1543_v22 = vld [vmem:[%s2403_s13] sm:$0xff] }
 0x571   : > { %v1240_v30 = vmax.f32 %v1231_v23, 0.0 }
 0x576   : > { %v1233_v12 = vpop.f32.mrf.mxu0 }
 0x577   : > { %v1234_v20 = vadd.f32 %v1233_v12, %v1191_v18 }
 0x579   : > { %v1241_v7 = vmax.f32 %v1234_v20, 0.0 }
 0x57e   : > { %v1236_v19 = vpop.f32.mrf.mxu0 }
 0x57f   : > { %v1237_v21 = vadd.f32 %v1236_v19, %v1196_v13 }
 0x581   : > { %v1242_v6 = vmax.f32 %v1237_v21, 0.0 }
 0x583   : > { %1303 = vmatpush.msra.mxu1 %v1242_v6 }
 0x585   : > { %1304 = vmatpush.msra.mxu1 %v1241_v7 }
 0x587   : > { %1305 = vmatpush.msra.mxu1 %v1240_v30 }
 0x589   : > { %1306 = vmatpush.msra.mxu1 %v1239_v8 }
 0x58b   : > { %1307 = vmatpush.msra.mxu1 %v2279_v49 }
 0x58d   : > { %1308 = vmatpush.msra.mxu1 %v2281_v5 }
 0x58f   : > { %1309 = vmatpush.msra.mxu1 %v2284_v51 }
 0x591   : > { %1310 = vmatpush.msra.mxu1 %v2287_v53 }
 0x593   : > { %1311 = vmatpush.msra.mxu1 %v2259_v41 }
 0x595   : > { %1312 = vmatpush.msra.mxu1 %v2261_v44 }
 0x597   : > { %1313 = vmatpush.msra.mxu1 %v2264_v45 }
 0x599   : > { %1314 = vmatpush.msra.mxu1 %v2267_v52 }
 0x59a   : > { %1691 = vmatmul.msk.f32.vlgmr.msra.gmra.mxu1 %vm820_vm3, %v2141_v26 }
 0x5a2   : > { %1692 = vmatmul.msk.f32.gmra.mxu1 %vm820_vm3, %v2149_v27 }
 0x5aa   : > { %1693 = vmatmul.msk.f32.gmra.mxu1 %vm820_vm3, %v2156_v28 }
 0x5b2   : > { %1694 = vmatmul.msk.f32.gmra.mxu1 %vm820_vm3, %v2163_v29 }
 0x617   : > { %v1316_v9 = vpop.f32.mrf.mxu1 }
 0x618   : > { %v1317_v42 = vadd.f32 %v1316_v9, %v1270_v40 }
 0x61a   : > { %v1328_v29 = vmax.f32 %v1317_v42, 0.0 }
 0x61f   : > { %v1319_v31 = vpop.f32.mrf.mxu1 }
 0x620   : > { %v1320_v39 = vadd.f32 %v1319_v31, %v1275_v38 }
 0x622   : > { %v1329_v28 = vmax.f32 %v1320_v39, 0.0 }
 0x627   : > { %v1322_v32 = vpop.f32.mrf.mxu1 }
 0x628   : > { %v1323_v36 = vadd.f32 %v1322_v32, %v1280_v34 }
 0x62a   : > { %v1330_v27 = vmax.f32 %v1323_v36, 0.0 }
 0x62f   : > { %v1325_v35 = vpop.f32.mrf.mxu1 }
 0x630   : > { %v1326_v37 = vadd.f32 %v1325_v35, %v1285_v33 }
 0x632   : > { %v1331_v26 = vmax.f32 %v1326_v37, 0.0 }
 0x634   : > { %1380 = vmatpush.msra.mxu2 %v1331_v26  ;;  %1481 = vmatpush.msra.mxu3 %v1331_v26 }
 0x636   : > { %1381 = vmatpush.msra.mxu2 %v1330_v27  ;;  %1482 = vmatpush.msra.mxu3 %v1330_v27 }
 0x638   : > { %1382 = vmatpush.msra.mxu2 %v1329_v28  ;;  %1483 = vmatpush.msra.mxu3 %v1329_v28 }
 0x63a   : > { %1383 = vmatpush.msra.mxu2 %v1328_v29  ;;  %1484 = vmatpush.msra.mxu3 %v1328_v29 }
 0x63c   : > { %1384 = vmatpush.msra.mxu2 %v1242_v6  ;;  %1485 = vmatpush.msra.mxu3 %v1242_v6 }
 0x63e   : > { %1385 = vmatpush.msra.mxu2 %v1241_v7  ;;  %1486 = vmatpush.msra.mxu3 %v1241_v7 }
 0x640   : > { %1386 = vmatpush.msra.mxu2 %v1240_v30  ;;  %1487 = vmatpush.msra.mxu3 %v1240_v30 }
 0x642   : > { %1387 = vmatpush.msra.mxu2 %v1239_v8  ;;  %1488 = vmatpush.msra.mxu3 %v1239_v8 }
 0x644   : > { %1388 = vmatpush.msra.mxu2 %v2279_v49  ;;  %1489 = vmatpush.msra.mxu3 %v2279_v49 }
 0x646   : > { %1389 = vmatpush.msra.mxu2 %v2281_v5  ;;  %1490 = vmatpush.msra.mxu3 %v2281_v5 }
 0x648   : > { %1390 = vmatpush.msra.mxu2 %v2284_v51  ;;  %1491 = vmatpush.msra.mxu3 %v2284_v51 }
 0x64a   : > { %1391 = vmatpush.msra.mxu2 %v2287_v53  ;;  %1492 = vmatpush.msra.mxu3 %v2287_v53 }
 0x64c   : > { %1392 = vmatpush.msra.mxu2 %v2259_v41  ;;  %1493 = vmatpush.msra.mxu3 %v2259_v41 }
 0x64e   : > { %1393 = vmatpush.msra.mxu2 %v2261_v44  ;;  %1494 = vmatpush.msra.mxu3 %v2261_v44 }
 0x650   : > { %1394 = vmatpush.msra.mxu2 %v2264_v45  ;;  %1495 = vmatpush.msra.mxu3 %v2264_v45 }
 0x652   : > { %1395 = vmatpush.msra.mxu2 %v2267_v52  ;;  %1496 = vmatpush.msra.mxu3 %v2267_v52  ;;  %v1378_v52 = vpop.permute.xlu0 %1377 }
 0x653   : > { %1396 = vmatmul.f32.vlgmr.msra.gmra.mxu2 %v2184_v54  ;;  %1497 = vmatmul.f32.vlgmr.msra.gmra.mxu3 %v2189_v55 }
 0x65b   : > { %1399 = vmatmul.f32.gmra.mxu2 %v2198_v43  ;;  %1500 = vmatmul.f32.gmra.mxu3 %v2203_v46  ;;  %v1363_v46 = vpop.permute.xlu0 %1362 }
 0x663   : > { %1402 = vmatmul.f32.gmra.mxu2 %v2210_v47  ;;  %1503 = vmatmul.f32.gmra.mxu3 %v2215_v48  ;;  %v1457_v51 = vpop.permute.xlu0 %1456 }
 0x66b   : > { %1405 = vmatmul.f32.gmra.mxu2 %v2222_v56  ;;  %1506 = vmatmul.f32.gmra.mxu3 %v2227_v57 }
 0x6d6   : > { %v1397_v41 = vpop.f32.mrf.mxu2  ;;  %v1498_v57 = vpop.f32.mrf.mxu3 }
 0x6d7   : > { %v1398_v62 = vadd.f32 %v1397_v41, %v1363_v46  ;;  %v1499_v11 = vadd.f32 %v1498_v57, %v1452_v10 }
 0x6d9   : > { %v1409_v56 = vmax.f32 %v1398_v62, 0.0 }
 0x6de   : > { %v1400_v44 = vpop.f32.mrf.mxu2  ;;  %v1501_v63 = vpop.f32.mrf.mxu3 }
 0x6df   : > { %v1401_v43 = vadd.f32 %v1400_v44, %v1368_v60  ;;  %v1502_v53 = vadd.f32 %v1501_v63, %v1457_v51 }
 0x6e1   : > { %v1410_v48 = vmax.f32 %v1401_v43, 0.0 }
 0x6e6   : > { %v1403_v45 = vpop.f32.mrf.mxu2  ;;  %v1504_v0 = vpop.f32.mrf.mxu3 }
 0x6e7   : > { %v1404_v59 = vadd.f32 %v1403_v45, %v1373_v58 }
 0x6e9   : > { %v1411_v47 = vmax.f32 %v1404_v59, 0.0 }
 0x6ee   : > { %v1406_v54 = vpop.f32.mrf.mxu2  ;;  %v1507_v1 = vpop.f32.mrf.mxu3 }
 0x6ef   : > { %v1407_v55 = vadd.f32 %v1406_v54, %v1378_v52  ;;  %v1508_v3 = vadd.f32 %v1507_v1, %v1467_v2 }
 0x6f1   : > { %v1412_v61 = vmax.f32 %v1407_v55, 0.0 }
 0x6f3   : > { %1522 = vmatpush.msrb.mxu0 %v1412_v61  ;;  %1704 = vmatpush.msrb.mxu1 %v1412_v61 }
 0x6f5   : > { %1523 = vmatpush.msrb.mxu0 %v1411_v47  ;;  %1705 = vmatpush.msrb.mxu1 %v1411_v47 }
 0x6f7   : > { %1524 = vmatpush.msrb.mxu0 %v1410_v48  ;;  %1706 = vmatpush.msrb.mxu1 %v1410_v48 }
 0x6f9   : > { %1525 = vmatpush.msrb.mxu0 %v1409_v56  ;;  %1707 = vmatpush.msrb.mxu1 %v1409_v56 }
 0x6fa   : > { %1695 = vmatmul.msk.f32.vlgmr.msrb.gmra.mxu0 %vm644_vm1, %v2234_v14  ;;  %1698 = vmatmul.msk.f32.vlgmr.msrb.gmra.mxu1 %vm644_vm1, %v2255_v17  ;;  %v1462_v17 = vpop.permute.xlu2 %1461 }
 0x702   : > { %1696 = vmatmul.msk.f32.gmra.mxu0 %vm644_vm1, %v2241_v15  ;;  %v1505_v15 = vadd.f32 %v1504_v0, %v1462_v17  ;;  %v1548_v23 = vpop.permute.xlu2 %1547 }
 0x70a   : > { %1697 = vmatmul.msk.f32.gmra.mxu0 %vm644_vm1, %v2248_v16 }
 0x777   : > { %v1527_v49 = vpop.f32.mrf.mxu0  ;;  %v1536_v4 = vpop.f32.mrf.mxu1 }
 0x778   : > { %v1537_v50 = vadd.f32 %v1536_v4, %v1508_v3  ;;  %v1528_v18 = vadd.f32 %v1527_v49, %v1499_v11 }
 0x77a   : > { %v1542_v5 = vmax.f32 %v1537_v50, 0.0  ;;  %v1539_v21 = vmax.f32 %v1528_v18, 0.0 }
 0x77c   : > { %1565 = vmatpush.msra.mxu1 %v1542_v5 }
 0x77f   : > { %v1530_v14 = vpop.f32.mrf.mxu0 }
 0x780   : > { %v1531_v12 = vadd.f32 %v1530_v14, %v1502_v53 }
 0x782   : > { %v1540_v20 = vmax.f32 %v1531_v12, 0.0 }
 0x787   : > { %v1533_v16 = vpop.f32.mrf.mxu0 }
 0x788   : > { %v1534_v13 = vadd.f32 %v1533_v16, %v1505_v15 }
 0x78a   : > { %v1541_v19 = vmax.f32 %v1534_v13, 0.0 }
 0x78c   : > { %1566 = vmatpush.msra.mxu1 %v1541_v19 }
 0x78e   : > { %1567 = vmatpush.msra.mxu1 %v1540_v20 }
 0x790   : > { %1568 = vmatpush.msra.mxu1 %v1539_v21 }
 0x791   : > { %1699 = vmatmul.msk.f32.vlgmr.msra.gmra.mxu1 %vm644_vm1, %v1543_v22 }
 0x80e   : > { %v1570_v6 = vpop.f32.mrf.mxu1 }
 0x80f   : > { %v1571_v24 = vadd.f32 %v1570_v6, %v1548_v23 }
 0x811   : > { %1573 = vst [vmem:[%s531_s20] sm:$0xff] %v1571_v24 }
 0x812   : > { %1778 = shalt.err (!%p1775_p5)
}
 0x813   : > { %1708 = dma.vmem_to_hbm [thread:$0]  (%p1934_p6), %s1588_s27, 128, %s1590_s1, %s1575_s26  }
 0x814 PF: > { %s1601_s22 = sand.u32 1, %s1801_s18   ;;  %p1711_p7 = pnand %p1657_p9, %p1938_p8 }
 0x815   : > { %s1602_s19 = scalar_lea.sflag [#allocation5], %s1601_s22 }
 0x816   : > { %p1712_p10 = pneg %p1711_p7 }
 0x818   : > { %1796 = dma.done.wait (%p1712_p10), %s1602_s19, 128  }
 0x819   : > { %1798 = vsyncadd (%p1712_p10), %s1602_s19, 4294967168  ;;  %s2421_s18 = sld [smem:[#allocation7_spill]]  ;;  %p25_p11 = scmp.ge.s32.totalorder %s1919_s24, 4  }
 0x81a   : > { %s2422_s19 = sld [smem:[#allocation8_spill]]  ;;  %s2424_s21 = smov %s1919_s24 }
 0x81b   : > { %s2423_s20 = sld [smem:[#allocation9_spill]]  ;;  %27 = sbr.rel (!%p25_p11) target bundleno = 7 (0x7), region = 158 }
 0x820   :  { %1608 = vsyncpa [#allocation5], 1 }
 0x821   :  { %1610 = vsyncpa [#allocation5 + $0x1], 1 }

</bundles_post_ra>
